<compile_context>
chip_gen: v6e
topology: v6e:2x2x1
jax: 0.10.0
libtpu: 0.0.40
codegen_flags: <defaults>
</compile_context>

<pallas_src>
from functools import partial

import jax
import jax.numpy as jnp
from jax import lax
from jax.experimental import pallas as pl
from jax.experimental.pallas import tpu as pltpu


# ---------------------------------------------------------------------------
# Kernel A: MLP (Linear -> ReLU -> Linear) + row-wise L2 normalize.
# ---------------------------------------------------------------------------
def mlp_normalize_kernel(x_ref, w1_ref, b1_ref, w2_ref, b2_ref, e_ref):
    x = x_ref[...]
    h = jnp.dot(x, w1_ref[...], preferred_element_type=jnp.float32) + b1_ref[...]
    h = jnp.maximum(h, 0.0)
    e = jnp.dot(h, w2_ref[...], preferred_element_type=jnp.float32) + b2_ref[...]
    # F.normalize(dim=1, p=2, eps=1e-12):  x / max(||x||, eps)
    #   == x * rsqrt(max(||x||^2, eps^2))   -> rsqrt on EUP slot, mul not div.
    sumsq = jnp.sum(e * e, axis=1, keepdims=True)
    e_ref[...] = e * lax.rsqrt(jnp.maximum(sumsq, 1e-24))


# ---------------------------------------------------------------------------
# Kernel B: per-row-tile similarity graph + threshold top-(k+1) + relu.
# ---------------------------------------------------------------------------
def sim_topk_kernel(eq_ref, ek_ref, out_ref, *, knn_k):
    eq = eq_ref[...]   # (tm, O) query-row tile of embeddings
    ek = ek_ref[...]   # (N,  O) all embeddings (resident across grid steps)

    # Similarity tile: contract the last dim of both operands directly on the
    # MXU -- avoids materializing e.T (XLU transpose + VMEM round-trip).
    s = lax.dot_general(
        eq, ek,
        dimension_numbers=(((1,), (1,)), ((), ())),
        preferred_element_type=jnp.float32,
    )

    # Threshold-based top-(knn_k + 1): after knn_k+1 "take row max, mask it out"
    # passes, the last row max is the per-row (k+1)-th largest value.
    def body(_, carry):
        work, _ = carry
        row_max = jnp.max(work, axis=1, keepdims=True)   # single XLU reduce / iter
        work = jnp.where(work == row_max, -jnp.inf, work)
        return work, row_max

    init = (s, jnp.full((s.shape[0], 1), jnp.inf, dtype=s.dtype))
    _, thresh = lax.fori_loop(0, knn_k + 1, body, init, unroll=True)

    # Keep entries >= threshold, then relu  (== relu(s * topk_mask) of reference).
    out_ref[...] = jnp.where(s >= thresh, jnp.maximum(s, 0.0), 0.0)


# ---------------------------------------------------------------------------
# Wrapper
# ---------------------------------------------------------------------------
def mlp_graph_gen_forward(features, w1, b1, w2, b2, *, knn_k, row_tile=128):
    n, _ = features.shape
    o = w2.shape[1]
    assert knn_k + 1 <= n, "top_k requires knn_k + 1 <= number of nodes"

    vmem = pl.BlockSpec(memory_space=pltpu.MemorySpace.VMEM)
    embeddings = pl.pallas_call(
        mlp_normalize_kernel,
        out_shape=jax.ShapeDtypeStruct((n, o), jnp.float32),
        in_specs=[vmem] * 5,
        out_specs=vmem,
    )(features, w1, b1, w2, b2)

    tm = min(row_tile, n)
    assert n % tm == 0, "N must be divisible by the row tile"

    out = pl.pallas_call(
        partial(sim_topk_kernel, knn_k=knn_k),
        out_shape=jax.ShapeDtypeStruct((n, n), jnp.float32),
        grid=(n // tm,),
        in_specs=[
            pl.BlockSpec((tm, o), lambda i: (i, 0)),   # query-row tile of embeddings
            pl.BlockSpec((n, o), lambda i: (0, 0)),    # full embeddings (kept resident)
        ],
        out_specs=pl.BlockSpec((tm, n), lambda i: (i, 0)),  # lane-dense (tm, N) tile
        compiler_params=pltpu.CompilerParams(
            dimension_semantics=("parallel",)),
    )(embeddings, embeddings)
    return out


if __name__ == "__main__":
    # N nodes, input_features=F, slaps_mlp_hidden=H, slaps_mlp_out=O,
    # slaps_mlp_layers=2, knn_k=7 (top_k keeps knn_k + 1 = 8 per row).
    N, F, H, O = 256, 64, 64, 32
    knn_k = 7

    key = jax.random.PRNGKey(0)
    kx, kw1, kb1, kw2, kb2 = jax.random.split(key, 5)

    features = jax.random.normal(kx, (N, F), dtype=jnp.float32)

    # Deterministic nn.Linear-style init: U(-1/sqrt(fan_in), 1/sqrt(fan_in)).
    lim1 = 1.0 / (F ** 0.5)
    lim2 = 1.0 / (H ** 0.5)
    w1 = jax.random.uniform(kw1, (F, H), jnp.float32, -lim1, lim1)
    b1 = jax.random.uniform(kb1, (1, H), jnp.float32, -lim1, lim1)
    w2 = jax.random.uniform(kw2, (H, O), jnp.float32, -lim2, lim2)
    b2 = jax.random.uniform(kb2, (1, O), jnp.float32, -lim2, lim2)

    out = mlp_graph_gen_forward(features, w1, b1, w2, b2, knn_k=knn_k)
    out = jax.block_until_ready(out)

    assert out.shape == (N, N)
    assert bool(jnp.all(jnp.isfinite(out)))
    # Self-similarity of an L2-normalized row is 1.0; it is the row max so it
    # always survives top-(k+1) and relu.
    assert bool(jnp.allclose(jnp.diagonal(out), 1.0, atol=1e-3))
    print("KERNEL_OK")
</pallas_src>

<mosaic_0001>
module attributes {stable_mosaic.version = 11 : i64} {
  func.func @mlp_normalize_kernel(%arg0: memref<256x64xf32, #tpu.memory_space<vmem>>, %arg1: memref<64x64xf32, #tpu.memory_space<vmem>>, %arg2: memref<1x64xf32, #tpu.memory_space<vmem>>, %arg3: memref<64x32xf32, #tpu.memory_space<vmem>>, %arg4: memref<1x32xf32, #tpu.memory_space<vmem>>, %arg5: memref<256x32xf32, #tpu.memory_space<vmem>>) attributes {dimension_semantics = [], scalar_prefetch = 0 : i64, scratch_operands = 0 : i64, tpu.core_type = #tpu.core_type<tc>} {
    %c0 = arith.constant 0 : index
    %c0_0 = arith.constant 0 : index
    %0 = vector.load %arg0[%c0, %c0_0] : memref<256x64xf32, #tpu.memory_space<vmem>>, vector<256x64xf32>
    %c0_1 = arith.constant 0 : index
    %c0_2 = arith.constant 0 : index
    %1 = vector.load %arg1[%c0_1, %c0_2] : memref<64x64xf32, #tpu.memory_space<vmem>>, vector<64x64xf32>
    %cst = arith.constant dense<0.000000e+00> : vector<256x64xf32>
    %2 = tpu.matmul %0, %1, %cst {dimension_numbers = #tpu.dot_dimension_numbers<[1], [0], [0], [1], [0, 0, 1, 1], [], []>} : vector<256x64xf32>, vector<64x64xf32>, vector<256x64xf32> -> vector<256x64xf32>
    %c0_3 = arith.constant 0 : index
    %c0_4 = arith.constant 0 : index
    %3 = vector.load %arg2[%c0_3, %c0_4] : memref<1x64xf32, #tpu.memory_space<vmem>>, vector<1x64xf32>
    %4 = vector.broadcast %3 : vector<1x64xf32> to vector<256x64xf32>
    %5 = arith.addf %2, %4 : vector<256x64xf32>
    %cst_5 = arith.constant 0.000000e+00 : f32
    %6 = vector.broadcast %cst_5 : f32 to vector<256x64xf32>
    %7 = arith.maximumf %5, %6 : vector<256x64xf32>
    %c0_6 = arith.constant 0 : index
    %c0_7 = arith.constant 0 : index
    %8 = vector.load %arg3[%c0_6, %c0_7] : memref<64x32xf32, #tpu.memory_space<vmem>>, vector<64x32xf32>
    %cst_8 = arith.constant dense<0.000000e+00> : vector<256x32xf32>
    %9 = tpu.matmul %7, %8, %cst_8 {dimension_numbers = #tpu.dot_dimension_numbers<[1], [0], [0], [1], [0, 0, 1, 1], [], []>} : vector<256x64xf32>, vector<64x32xf32>, vector<256x32xf32> -> vector<256x32xf32>
    %c0_9 = arith.constant 0 : index
    %c0_10 = arith.constant 0 : index
    %10 = vector.load %arg4[%c0_9, %c0_10] : memref<1x32xf32, #tpu.memory_space<vmem>>, vector<1x32xf32>
    %11 = vector.broadcast %10 : vector<1x32xf32> to vector<256x32xf32>
    %12 = arith.addf %9, %11 : vector<256x32xf32>
    %13 = arith.mulf %12, %12 : vector<256x32xf32>
    %cst_11 = arith.constant dense<0.000000e+00> : vector<256xf32>
    %14 = vector.multi_reduction <add>, %13, %cst_11 [1] : vector<256x32xf32> to vector<256xf32>
    %15 = vector.shape_cast %14 : vector<256xf32> to vector<256x1xf32>
    %cst_12 = arith.constant 1.000000e-24 : f32
    %16 = vector.broadcast %cst_12 : f32 to vector<256x1xf32>
    %17 = arith.maximumf %15, %16 : vector<256x1xf32>
    %18 = math.rsqrt %17 : vector<256x1xf32>
    %19 = vector.broadcast %18 : vector<256x1xf32> to vector<256x32xf32>
    %20 = arith.mulf %12, %19 : vector<256x32xf32>
    %c0_13 = arith.constant 0 : index
    %c0_14 = arith.constant 0 : index
    %21 = vector.load %arg5[%c0_13, %c0_14] : memref<256x32xf32, #tpu.memory_space<vmem>>, vector<256x32xf32>
    tpu.vector_store %arg5[%c0_13, %c0_14], %20 {strides = array<i32>} : memref<256x32xf32, #tpu.memory_space<vmem>>, vector<256x32xf32>,
    return
  }
}

</mosaic_0001>

<bundles_post_ra>
// kernel: tpu_custom_call.1
= control target key start
LH: loop header
LB: loop body
LE: loop exit
PB: predicated region body
PF: predicated region fallthrough
CT: control target
= control target key end

     0   :  { %vm67_vm0 = vcmask 523264   ;;  %vm789_vm1 = vcmask 261120   ;;  %s1988_s1 = inlined_call_operand.vmem [shape: f32[64,64], index: 1, kind: input, shape index: {}]   ;;  %s1989_s0 = inlined_call_operand.vmem [shape: f32[256,64], index: 0, kind: input, shape index: {}]   ;;  %s1990_s3 = inlined_call_operand.vmem [shape: f32[64,32], index: 3, kind: input, shape index: {}]   ;;  %s1991_s2 = inlined_call_operand.vmem [shape: f32[1,64], index: 2, kind: input, shape index: {}]   ;;  %s1992_s4 = inlined_call_operand.vmem [shape: f32[1,32], index: 4, kind: input, shape index: {}]   ;;  %s1993_s5 = inlined_call_operand.vmem [shape: f32[256,32], index: 5, kind: output, shape index: {}]  }
   0x1   :  { %v59_v0 = vld [vmem:[%s1988_s1 + $0x38] sm:$0xff]  ;;  %v58_v1 = vld [vmem:[%s1988_s1 + $0x30] sm:$0xff]  ;;  %v57_v2 = vld [vmem:[%s1988_s1 + $0x28] sm:$0xff] }
   0x2   :  { %1164 = vmatprep.subr.mxu0 %v59_v0  ;;  %v20_v3 = vld [vmem:[%s1989_s0] sm:$0xff]  ;;  %v55_v5 = vld [vmem:[%s1988_s1 + $0x18] sm:$0xff]  ;;  %v54_v6 = vld [vmem:[%s1988_s1 + $0x10] sm:$0xff] }
   0x3   :  { %1165 = vmatpush3.msra.mxu0 %v59_v0  ;;  %1180 = vmatprep.mubr.msk.f32.mxu0 %vm67_vm0, %v20_v3  ;;  %v56_v4 = vld [vmem:[%s1988_s1 + $0x20] sm:$0xff]  ;;  %v53_v7 = vld [vmem:[%s1988_s1 + $0x8] sm:$0xff]  ;;  %v428_v9 = vld [vmem:[%s1990_s3 + $0x38] sm:$0xff] }
   0x4   :  { %1166 = vmatprep.subr.mxu0 %v58_v1  ;;  %v52_v8 = vld [vmem:[%s1988_s1] sm:$0xff]  ;;  %v427_v10 = vld [vmem:[%s1990_s3 + $0x30] sm:$0xff]  ;;  %v21_v11 = vld [vmem:[%s1989_s0 + $0x8] sm:$0xff]  ;;  %1228 = vmatprep.subr.mxu1 %v428_v9 }
   0x5   :  { %1167 = vmatpush3.msra.mxu0 %v58_v1  ;;  %v22_v12 = vld [vmem:[%s1989_s0 + $0x10] sm:$0xff]  ;;  %1229 = vmatpush3.msra.mxu1 %v428_v9  ;;  %v426_v13 = vld [vmem:[%s1990_s3 + $0x28] sm:$0xff]  ;;  %v425_v14 = vld [vmem:[%s1990_s3 + $0x20] sm:$0xff] }
   0x6   :  { %1168 = vmatprep.subr.mxu0 %v57_v2  ;;  %1230 = vmatprep.subr.mxu1 %v427_v10  ;;  %v23_v15 = vld [vmem:[%s1989_s0 + $0x18] sm:$0xff]  ;;  %v24_v16 = vld [vmem:[%s1989_s0 + $0x20] sm:$0xff]  ;;  %v25_v17 = vld [vmem:[%s1989_s0 + $0x28] sm:$0xff] }
   0x7   :  { %1169 = vmatpush3.msra.mxu0 %v57_v2  ;;  %1231 = vmatpush3.msra.mxu1 %v427_v10  ;;  %v26_v18 = vld [vmem:[%s1989_s0 + $0x30] sm:$0xff]  ;;  %v27_v19 = vld [vmem:[%s1989_s0 + $0x38] sm:$0xff]  ;;  %v28_v20 = vld [vmem:[%s1989_s0 + $0x40] sm:$0xff] }
   0x8   :  { %1170 = vmatprep.subr.mxu0 %v56_v4  ;;  %1232 = vmatprep.subr.mxu1 %v426_v13  ;;  %v29_v21 = vld [vmem:[%s1989_s0 + $0x48] sm:$0xff]  ;;  %v30_v22 = vld [vmem:[%s1989_s0 + $0x50] sm:$0xff]  ;;  %v31_v23 = vld [vmem:[%s1989_s0 + $0x58] sm:$0xff] }
   0x9   :  { %1171 = vmatpush3.msra.mxu0 %v56_v4  ;;  %1233 = vmatpush3.msra.mxu1 %v426_v13  ;;  %v32_v24 = vld [vmem:[%s1989_s0 + $0x60] sm:$0xff]  ;;  %v33_v25 = vld [vmem:[%s1989_s0 + $0x68] sm:$0xff]  ;;  %v34_v26 = vld [vmem:[%s1989_s0 + $0x70] sm:$0xff] }
   0xa   :  { %1172 = vmatprep.subr.mxu0 %v55_v5  ;;  %1234 = vmatprep.subr.mxu1 %v425_v14  ;;  %v35_v27 = vld [vmem:[%s1989_s0 + $0x78] sm:$0xff]  ;;  %v36_v28 = vld [vmem:[%s1989_s0 + $0x80] sm:$0xff]  ;;  %v37_v29 = vld [vmem:[%s1989_s0 + $0x88] sm:$0xff] }
   0xb   :  { %1173 = vmatpush3.msra.mxu0 %v55_v5  ;;  %1235 = vmatpush3.msra.mxu1 %v425_v14  ;;  %v38_v30 = vld [vmem:[%s1989_s0 + $0x90] sm:$0xff]  ;;  %v39_v31 = vld [vmem:[%s1989_s0 + $0x98] sm:$0xff]  ;;  %v40_v32 = vld [vmem:[%s1989_s0 + $0xa0] sm:$0xff] }
   0xc   :  { %1174 = vmatprep.subr.mxu0 %v54_v6  ;;  %v41_v33 = vld [vmem:[%s1989_s0 + $0xa8] sm:$0xff]  ;;  %v42_v34 = vld [vmem:[%s1989_s0 + $0xb0] sm:$0xff]  ;;  %v43_v35 = vld [vmem:[%s1989_s0 + $0xb8] sm:$0xff] }
   0xd   :  { %1175 = vmatpush3.msra.mxu0 %v54_v6  ;;  %v44_v36 = vld [vmem:[%s1989_s0 + $0xc0] sm:$0xff]  ;;  %v45_v37 = vld [vmem:[%s1989_s0 + $0xc8] sm:$0xff]  ;;  %v46_v38 = vld [vmem:[%s1989_s0 + $0xd0] sm:$0xff] }
   0xe   :  { %1176 = vmatprep.subr.mxu0 %v53_v7  ;;  %v47_v39 = vld [vmem:[%s1989_s0 + $0xd8] sm:$0xff]  ;;  %v48_v40 = vld [vmem:[%s1989_s0 + $0xe0] sm:$0xff]  ;;  %v49_v41 = vld [vmem:[%s1989_s0 + $0xe8] sm:$0xff] }
   0xf   :  { %1177 = vmatpush3.msra.mxu0 %v53_v7  ;;  %v50_v42 = vld [vmem:[%s1989_s0 + $0xf0] sm:$0xff]  ;;  %v51_v43 = vld [vmem:[%s1989_s0 + $0xf8] sm:$0xff]  ;;  %v422_v46 = vld [vmem:[%s1990_s3 + $0x8] sm:$0xff] }
  0x10   :  { %1178 = vmatprep.subr.mxu0 %v52_v8  ;;  %v424_v44 = vld [vmem:[%s1990_s3 + $0x18] sm:$0xff]  ;;  %v423_v45 = vld [vmem:[%s1990_s3 + $0x10] sm:$0xff]  ;;  %v421_v47 = vld [vmem:[%s1990_s3] sm:$0xff] }
  0x11   :  { %1179 = vmatpush3.msra.mxu0 %v52_v8  ;;  %1236 = vmatprep.subr.mxu1 %v424_v44  ;;  %v1565_v48 = vld [vmem:[%s1991_s2] ss:$0 sm:$0xff] }
  0x12   :  { %1181 = vmatmul.mubr.msk.f32.vlgmr.msra.gmra.mxu0 %vm67_vm0, %v21_v11  ;;  %1237 = vmatpush3.msra.mxu1 %v424_v44 }
  0x13   :  { %1183 = vmatprep.mubr.msk.f32.mxu0 %vm67_vm0, %v22_v12  ;;  %1238 = vmatprep.subr.mxu1 %v423_v45 }
  0x14   :  { %1239 = vmatpush3.msra.mxu1 %v423_v45 }
  0x15   :  { %1240 = vmatprep.subr.mxu1 %v422_v46 }
  0x16   :  { %1184 = vmatmul.mubr.msk.f32.gmra.mxu0 %vm67_vm0, %v23_v15  ;;  %1241 = vmatpush3.msra.mxu1 %v422_v46 }
  0x17   :  { %1186 = vmatprep.mubr.msk.f32.mxu0 %vm67_vm0, %v24_v16  ;;  %1242 = vmatprep.subr.mxu1 %v421_v47 }
  0x18   :  { %1243 = vmatpush3.msra.mxu1 %v421_v47 }
  0x1a   :  { %1187 = vmatmul.mubr.msk.f32.gmra.mxu0 %vm67_vm0, %v25_v17 }
  0x1b   :  { %1189 = vmatprep.mubr.msk.f32.mxu0 %vm67_vm0, %v26_v18 }
  0x1e   :  { %1190 = vmatmul.mubr.msk.f32.gmra.mxu0 %vm67_vm0, %v27_v19 }
  0x1f   :  { %1192 = vmatprep.mubr.msk.f32.mxu0 %vm67_vm0, %v28_v20 }
  0x22   :  { %1193 = vmatmul.mubr.msk.f32.gmra.mxu0 %vm67_vm0, %v29_v21 }
  0x23   :  { %1195 = vmatprep.mubr.msk.f32.mxu0 %vm67_vm0, %v30_v22 }
  0x26   :  { %1196 = vmatmul.mubr.msk.f32.gmra.mxu0 %vm67_vm0, %v31_v23 }
  0x27   :  { %1198 = vmatprep.mubr.msk.f32.mxu0 %vm67_vm0, %v32_v24 }
  0x2a   :  { %1199 = vmatmul.mubr.msk.f32.gmra.mxu0 %vm67_vm0, %v33_v25 }
  0x2b   :  { %1201 = vmatprep.mubr.msk.f32.mxu0 %vm67_vm0, %v34_v26 }
  0x2e   :  { %1202 = vmatmul.mubr.msk.f32.gmra.mxu0 %vm67_vm0, %v35_v27 }
  0x2f   :  { %1204 = vmatprep.mubr.msk.f32.mxu0 %vm67_vm0, %v36_v28 }
  0x32   :  { %1205 = vmatmul.mubr.msk.f32.gmra.mxu0 %vm67_vm0, %v37_v29 }
  0x33   :  { %1207 = vmatprep.mubr.msk.f32.mxu0 %vm67_vm0, %v38_v30 }
  0x36   :  { %1208 = vmatmul.mubr.msk.f32.gmra.mxu0 %vm67_vm0, %v39_v31 }
  0x37   :  { %1210 = vmatprep.mubr.msk.f32.mxu0 %vm67_vm0, %v40_v32 }
  0x3a   :  { %1211 = vmatmul.mubr.msk.f32.gmra.mxu0 %vm67_vm0, %v41_v33 }
  0x3b   :  { %1213 = vmatprep.mubr.msk.f32.mxu0 %vm67_vm0, %v42_v34 }
  0x3e   :  { %1214 = vmatmul.mubr.msk.f32.gmra.mxu0 %vm67_vm0, %v43_v35 }
  0x3f   :  { %1216 = vmatprep.mubr.msk.f32.mxu0 %vm67_vm0, %v44_v36 }
  0x42   :  { %1217 = vmatmul.mubr.msk.f32.gmra.mxu0 %vm67_vm0, %v45_v37 }
  0x43   :  { %1219 = vmatprep.mubr.msk.f32.mxu0 %vm67_vm0, %v46_v38 }
  0x46   :  { %1220 = vmatmul.mubr.msk.f32.gmra.mxu0 %vm67_vm0, %v47_v39 }
  0x47   :  { %1222 = vmatprep.mubr.msk.f32.mxu0 %vm67_vm0, %v48_v40 }
  0x4a   :  { %1223 = vmatmul.mubr.msk.f32.gmra.mxu0 %vm67_vm0, %v49_v41 }
  0x4b   :  { %1225 = vmatprep.mubr.msk.f32.mxu0 %vm67_vm0, %v50_v42 }
  0x4e   :  { %1226 = vmatmul.mubr.msk.f32.gmra.mxu0 %vm67_vm0, %v51_v43 }
  0xd2   :  { %v1182_v49 = vpop.f32.mrf.mxu0 }
  0xd3   :  { %v236_v50 = vadd.f32 %v1182_v49, %v1565_v48 }
  0xd4   :  { %v230_v51 = vpop.f32.mrf.mxu0 }
  0xd5   :  { %v231_v52 = vadd.f32 %v1565_v48, %v230_v51  ;;  %v390_v55 = vmax.f32 %v236_v50, 0.0 }
  0xd6   :  { %v1185_v53 = vpop.f32.mrf.mxu0 }
  0xd7   :  { %v389_v54 = vmax.f32 %v231_v52, 0.0  ;;  %v246_v56 = vadd.f32 %v1185_v53, %v1565_v48 }
  0xd8   :  { %v240_v57 = vpop.f32.mrf.mxu0 }
  0xd9   :  { %v241_v58 = vadd.f32 %v1565_v48, %v240_v57  ;;  %1244 = vmatprep.mubr.msk.f32.mxu1 %vm67_vm0, %v389_v54  ;;  %v392_v62 = vmax.f32 %v246_v56, 0.0 }
  0xda   :  { %v1188_v59 = vpop.f32.mrf.mxu0  ;;  %1245 = vmatmul.mubr.msk.f32.vlgmr.msra.gmra.mxu1 %vm67_vm0, %v390_v55 }
  0xdb   :  { %v391_v60 = vmax.f32 %v241_v58, 0.0  ;;  %v256_v61 = vadd.f32 %v1188_v59, %v1565_v48 }
  0xdc   :  { %v250_v63 = vpop.f32.mrf.mxu0 }
  0xdd   :  { %v251_v0 = vadd.f32 %v1565_v48, %v250_v63  ;;  %1247 = vmatprep.mubr.msk.f32.mxu1 %vm67_vm0, %v391_v60  ;;  %v394_v1 = vmax.f32 %v256_v61, 0.0 }
  0xde   :  { %v1191_v2 = vpop.f32.mrf.mxu0  ;;  %1248 = vmatmul.mubr.msk.f32.gmra.mxu1 %vm67_vm0, %v392_v62 }
  0xdf   :  { %v393_v3 = vmax.f32 %v251_v0, 0.0  ;;  %v266_v4 = vadd.f32 %v1191_v2, %v1565_v48 }
  0xe0   :  { %v260_v5 = vpop.f32.mrf.mxu0 }
  0xe1   :  { %v261_v6 = vadd.f32 %v1565_v48, %v260_v5  ;;  %1250 = vmatprep.mubr.msk.f32.mxu1 %vm67_vm0, %v393_v3  ;;  %v396_v7 = vmax.f32 %v266_v4, 0.0 }
  0xe2   :  { %v1194_v8 = vpop.f32.mrf.mxu0  ;;  %1251 = vmatmul.mubr.msk.f32.gmra.mxu1 %vm67_vm0, %v394_v1 }
  0xe3   :  { %v395_v9 = vmax.f32 %v261_v6, 0.0  ;;  %v276_v10 = vadd.f32 %v1194_v8, %v1565_v48 }
  0xe4   :  { %v270_v11 = vpop.f32.mrf.mxu0 }
  0xe5   :  { %v271_v12 = vadd.f32 %v1565_v48, %v270_v11  ;;  %1253 = vmatprep.mubr.msk.f32.mxu1 %vm67_vm0, %v395_v9  ;;  %v398_v13 = vmax.f32 %v276_v10, 0.0 }
  0xe6   :  { %v1197_v14 = vpop.f32.mrf.mxu0  ;;  %1254 = vmatmul.mubr.msk.f32.gmra.mxu1 %vm67_vm0, %v396_v7 }
  0xe7   :  { %v397_v15 = vmax.f32 %v271_v12, 0.0  ;;  %v286_v16 = vadd.f32 %v1197_v14, %v1565_v48 }
  0xe8   :  { %v280_v17 = vpop.f32.mrf.mxu0 }
  0xe9   :  { %v281_v18 = vadd.f32 %v1565_v48, %v280_v17  ;;  %1256 = vmatprep.mubr.msk.f32.mxu1 %vm67_vm0, %v397_v15  ;;  %v400_v19 = vmax.f32 %v286_v16, 0.0 }
  0xea   :  { %v1200_v20 = vpop.f32.mrf.mxu0  ;;  %1257 = vmatmul.mubr.msk.f32.gmra.mxu1 %vm67_vm0, %v398_v13 }
  0xeb   :  { %v399_v21 = vmax.f32 %v281_v18, 0.0  ;;  %v296_v22 = vadd.f32 %v1200_v20, %v1565_v48  ;;  %v1634_v18 = vld [vmem:[%s1992_s4] ss:$0 sm:$0xff] }
  0xec   :  { %v290_v23 = vpop.f32.mrf.mxu0 }
  0xed   :  { %v291_v24 = vadd.f32 %v1565_v48, %v290_v23  ;;  %1259 = vmatprep.mubr.msk.f32.mxu1 %vm67_vm0, %v399_v21  ;;  %v402_v25 = vmax.f32 %v296_v22, 0.0 }
  0xee   :  { %v1203_v26 = vpop.f32.mrf.mxu0  ;;  %1260 = vmatmul.mubr.msk.f32.gmra.mxu1 %vm67_vm0, %v400_v19 }
  0xef   :  { %v401_v27 = vmax.f32 %v291_v24, 0.0  ;;  %v306_v28 = vadd.f32 %v1203_v26, %v1565_v48 }
  0xf0   :  { %v300_v29 = vpop.f32.mrf.mxu0 }
  0xf1   :  { %v301_v30 = vadd.f32 %v1565_v48, %v300_v29  ;;  %1262 = vmatprep.mubr.msk.f32.mxu1 %vm67_vm0, %v401_v27  ;;  %v404_v31 = vmax.f32 %v306_v28, 0.0 }
  0xf2   :  { %v1206_v32 = vpop.f32.mrf.mxu0  ;;  %1263 = vmatmul.mubr.msk.f32.gmra.mxu1 %vm67_vm0, %v402_v25 }
  0xf3   :  { %v403_v33 = vmax.f32 %v301_v30, 0.0  ;;  %v316_v34 = vadd.f32 %v1206_v32, %v1565_v48 }
  0xf4   :  { %v310_v35 = vpop.f32.mrf.mxu0 }
  0xf5   :  { %v311_v36 = vadd.f32 %v1565_v48, %v310_v35  ;;  %1265 = vmatprep.mubr.msk.f32.mxu1 %vm67_vm0, %v403_v33  ;;  %v406_v37 = vmax.f32 %v316_v34, 0.0 }
  0xf6   :  { %v1209_v38 = vpop.f32.mrf.mxu0  ;;  %1266 = vmatmul.mubr.msk.f32.gmra.mxu1 %vm67_vm0, %v404_v31 }
  0xf7   :  { %v405_v39 = vmax.f32 %v311_v36, 0.0  ;;  %v326_v40 = vadd.f32 %v1209_v38, %v1565_v48 }
  0xf8   :  { %v320_v41 = vpop.f32.mrf.mxu0 }
  0xf9   :  { %v321_v42 = vadd.f32 %v1565_v48, %v320_v41  ;;  %1268 = vmatprep.mubr.msk.f32.mxu1 %vm67_vm0, %v405_v39  ;;  %v408_v43 = vmax.f32 %v326_v40, 0.0 }
  0xfa   :  { %v1212_v44 = vpop.f32.mrf.mxu0  ;;  %1269 = vmatmul.mubr.msk.f32.gmra.mxu1 %vm67_vm0, %v406_v37 }
  0xfb   :  { %v407_v45 = vmax.f32 %v321_v42, 0.0  ;;  %v336_v46 = vadd.f32 %v1212_v44, %v1565_v48 }
  0xfc   :  { %v330_v47 = vpop.f32.mrf.mxu0 }
  0xfd   :  { %v331_v49 = vadd.f32 %v1565_v48, %v330_v47  ;;  %1271 = vmatprep.mubr.msk.f32.mxu1 %vm67_vm0, %v407_v45  ;;  %v410_v50 = vmax.f32 %v336_v46, 0.0 }
  0xfe   :  { %v1215_v51 = vpop.f32.mrf.mxu0  ;;  %1272 = vmatmul.mubr.msk.f32.gmra.mxu1 %vm67_vm0, %v408_v43 }
  0xff   :  { %v409_v52 = vmax.f32 %v331_v49, 0.0  ;;  %v346_v53 = vadd.f32 %v1215_v51, %v1565_v48 }
 0x100   :  { %v340_v54 = vpop.f32.mrf.mxu0 }
 0x101   :  { %v341_v55 = vadd.f32 %v1565_v48, %v340_v54  ;;  %1274 = vmatprep.mubr.msk.f32.mxu1 %vm67_vm0, %v409_v52  ;;  %v412_v56 = vmax.f32 %v346_v53, 0.0 }
 0x102   :  { %v1218_v57 = vpop.f32.mrf.mxu0  ;;  %1275 = vmatmul.mubr.msk.f32.gmra.mxu1 %vm67_vm0, %v410_v50 }
 0x103   :  { %v411_v58 = vmax.f32 %v341_v55, 0.0  ;;  %v356_v59 = vadd.f32 %v1218_v57, %v1565_v48 }
 0x104   :  { %v350_v60 = vpop.f32.mrf.mxu0 }
 0x105   :  { %v351_v61 = vadd.f32 %v1565_v48, %v350_v60  ;;  %1277 = vmatprep.mubr.msk.f32.mxu1 %vm67_vm0, %v411_v58  ;;  %v414_v62 = vmax.f32 %v356_v59, 0.0 }
 0x106   :  { %v1221_v63 = vpop.f32.mrf.mxu0  ;;  %1278 = vmatmul.mubr.msk.f32.gmra.mxu1 %vm67_vm0, %v412_v56 }
 0x107   :  { %v413_v0 = vmax.f32 %v351_v61, 0.0  ;;  %v366_v1 = vadd.f32 %v1221_v63, %v1565_v48 }
 0x108   :  { %v360_v2 = vpop.f32.mrf.mxu0 }
 0x109   :  { %v361_v3 = vadd.f32 %v1565_v48, %v360_v2  ;;  %1280 = vmatprep.mubr.msk.f32.mxu1 %vm67_vm0, %v413_v0  ;;  %v416_v4 = vmax.f32 %v366_v1, 0.0 }
 0x10a   :  { %v1224_v5 = vpop.f32.mrf.mxu0  ;;  %1281 = vmatmul.mubr.msk.f32.gmra.mxu1 %vm67_vm0, %v414_v62 }
 0x10b   :  { %v415_v6 = vmax.f32 %v361_v3, 0.0  ;;  %v376_v7 = vadd.f32 %v1224_v5, %v1565_v48 }
 0x10c   :  { %v370_v8 = vpop.f32.mrf.mxu0 }
 0x10d   :  { %v371_v9 = vadd.f32 %v1565_v48, %v370_v8  ;;  %1283 = vmatprep.mubr.msk.f32.mxu1 %vm67_vm0, %v415_v6  ;;  %v418_v10 = vmax.f32 %v376_v7, 0.0 }
 0x10e   :  { %v1227_v11 = vpop.f32.mrf.mxu0  ;;  %1284 = vmatmul.mubr.msk.f32.gmra.mxu1 %vm67_vm0, %v416_v4 }
 0x10f   :  { %v417_v12 = vmax.f32 %v371_v9, 0.0  ;;  %v386_v13 = vadd.f32 %v1227_v11, %v1565_v48 }
 0x110   :  { %v380_v14 = vpop.f32.mrf.mxu0 }
 0x111   :  { %v381_v15 = vadd.f32 %v1565_v48, %v380_v14  ;;  %1286 = vmatprep.mubr.msk.f32.mxu1 %vm67_vm0, %v417_v12  ;;  %v420_v16 = vmax.f32 %v386_v13, 0.0 }
 0x112   :  { %1287 = vmatmul.mubr.msk.f32.gmra.mxu1 %vm67_vm0, %v418_v10 }
 0x113   :  { %v419_v17 = vmax.f32 %v381_v15, 0.0 }
 0x115   :  { %1289 = vmatprep.mubr.msk.f32.mxu1 %vm67_vm0, %v419_v17 }
 0x116   :  { %1290 = vmatmul.mubr.msk.f32.gmra.mxu1 %vm67_vm0, %v420_v16 }
 0x19a   :  { %v1246_v19 = vpop.f32.mrf.mxu1 }
 0x19b   :  { %v1637_v20 = vadd.f32 %v1246_v19, %v1634_v18 }
 0x19c   :  { %v598_v48 = vpop.f32.mrf.mxu1 }
 0x19d   :  { %v1640_v21 = vadd.f32 %v1634_v18, %v598_v48  ;;  %v758_v22 = vmul.f32 %v1637_v20, %v1637_v20 }
 0x19e   :  { %v1249_v23 = vpop.f32.mrf.mxu1 }
 0x19f   :  { %v1645_v24 = vadd.f32 %v1249_v23, %v1634_v18  ;;  %v793_v25 = vsel %vm789_vm1, %v758_v22, 0.0  ;;  %v757_v26 = vmul.f32 %v1640_v21, %v1640_v21 }
 0x1a0   :  { %794 = vadd.xlane.f32.xlu0 %v793_v25  ;;  %v608_v27 = vpop.f32.mrf.mxu1 }
 0x1a1   :  { %v1651_v28 = vadd.f32 %v1634_v18, %v608_v27  ;;  %v760_v29 = vmul.f32 %v1645_v24, %v1645_v24  ;;  %v790_v33 = vsel %vm789_vm1, %v757_v26, 0.0 }
 0x1a2   :  { %v1252_v30 = vpop.f32.mrf.mxu1 }
 0x1a3   :  { %v1656_v31 = vadd.f32 %v1252_v30, %v1634_v18  ;;  %v799_v32 = vsel %vm789_vm1, %v760_v29, 0.0  ;;  %v759_v34 = vmul.f32 %v1651_v28, %v1651_v28 }
 0x1a4   :  { %800 = vadd.xlane.f32.xlu1 %v799_v32  ;;  %v618_v35 = vpop.f32.mrf.mxu1  ;;  %791 = vadd.xlane.f32.xlu0 %v790_v33 }
 0x1a5   :  { %v1663_v36 = vadd.f32 %v1634_v18, %v618_v35  ;;  %v796_v39 = vsel %vm789_vm1, %v759_v34, 0.0  ;;  %v762_v41 = vmul.f32 %v1656_v31, %v1656_v31 }
 0x1a6   :  { %v1255_v37 = vpop.f32.mrf.mxu1 }
 0x1a7   :  { %v1666_v38 = vadd.f32 %v1255_v37, %v1634_v18  ;;  %v761_v40 = vmul.f32 %v1663_v36, %v1663_v36  ;;  %v805_v47 = vsel %vm789_vm1, %v762_v41, 0.0 }
 0x1a8   :  { %v628_v42 = vpop.f32.mrf.mxu1  ;;  %797 = vadd.xlane.f32.xlu1 %v796_v39 }
 0x1a9   :  { %v1674_v43 = vadd.f32 %v1634_v18, %v628_v42  ;;  %v802_v44 = vsel %vm789_vm1, %v761_v40, 0.0  ;;  %v764_v50 = vmul.f32 %v1666_v38, %v1666_v38 }
 0x1aa   :  { %v1258_v45 = vpop.f32.mrf.mxu1  ;;  %803 = vadd.xlane.f32.xlu0 %v802_v44 }
 0x1ab   :  { %v1678_v46 = vadd.f32 %v1258_v45, %v1634_v18  ;;  %v763_v49 = vmul.f32 %v1674_v43, %v1674_v43  ;;  %v811_v56 = vsel %vm789_vm1, %v764_v50, 0.0 }
 0x1ac   :  { %v638_v51 = vpop.f32.mrf.mxu1  ;;  %806 = vadd.xlane.f32.xlu1 %v805_v47 }
 0x1ad   :  { %v1686_v52 = vadd.f32 %v1634_v18, %v638_v51  ;;  %v808_v53 = vsel %vm789_vm1, %v763_v49, 0.0  ;;  %v766_v58 = vmul.f32 %v1678_v46, %v1678_v46 }
 0x1ae   :  { %v1261_v54 = vpop.f32.mrf.mxu1  ;;  %809 = vadd.xlane.f32.xlu0 %v808_v53 }
 0x1af   :  { %v1690_v55 = vadd.f32 %v1261_v54, %v1634_v18  ;;  %v765_v57 = vmul.f32 %v1686_v52, %v1686_v52  ;;  %v817_v0 = vsel %vm789_vm1, %v766_v58, 0.0 }
 0x1b0   :  { %v648_v59 = vpop.f32.mrf.mxu1  ;;  %812 = vadd.xlane.f32.xlu1 %v811_v56 }
 0x1b1   :  { %v1698_v60 = vadd.f32 %v1634_v18, %v648_v59  ;;  %v814_v61 = vsel %vm789_vm1, %v765_v57, 0.0  ;;  %v768_v2 = vmul.f32 %v1690_v55, %v1690_v55 }
 0x1b2   :  { %v1264_v62 = vpop.f32.mrf.mxu1  ;;  %815 = vadd.xlane.f32.xlu0 %v814_v61 }
 0x1b3   :  { %v1702_v63 = vadd.f32 %v1264_v62, %v1634_v18  ;;  %v767_v1 = vmul.f32 %v1698_v60, %v1698_v60  ;;  %v823_v8 = vsel %vm789_vm1, %v768_v2, 0.0 }
 0x1b4   :  { %v658_v3 = vpop.f32.mrf.mxu1  ;;  %818 = vadd.xlane.f32.xlu1 %v817_v0 }
 0x1b5   :  { %v1710_v4 = vadd.f32 %v1634_v18, %v658_v3  ;;  %v820_v5 = vsel %vm789_vm1, %v767_v1, 0.0  ;;  %v770_v10 = vmul.f32 %v1702_v63, %v1702_v63 }
 0x1b6   :  { %v1267_v6 = vpop.f32.mrf.mxu1  ;;  %821 = vadd.xlane.f32.xlu0 %v820_v5 }
 0x1b7   :  { %v1714_v7 = vadd.f32 %v1267_v6, %v1634_v18  ;;  %v769_v9 = vmul.f32 %v1710_v4, %v1710_v4  ;;  %v829_v16 = vsel %vm789_vm1, %v770_v10, 0.0 }
 0x1b8   :  { %v668_v11 = vpop.f32.mrf.mxu1  ;;  %824 = vadd.xlane.f32.xlu1 %v823_v8 }
 0x1b9   :  { %v1722_v12 = vadd.f32 %v1634_v18, %v668_v11  ;;  %v826_v13 = vsel %vm789_vm1, %v769_v9, 0.0  ;;  %v772_v19 = vmul.f32 %v1714_v7, %v1714_v7 }
 0x1ba   :  { %v1270_v14 = vpop.f32.mrf.mxu1  ;;  %827 = vadd.xlane.f32.xlu0 %v826_v13 }
 0x1bb   :  { %v1726_v15 = vadd.f32 %v1270_v14, %v1634_v18  ;;  %v771_v17 = vmul.f32 %v1722_v12, %v1722_v12  ;;  %v835_v27 = vsel %vm789_vm1, %v772_v19, 0.0 }
 0x1bc   :  { %v678_v48 = vpop.f32.mrf.mxu1  ;;  %830 = vadd.xlane.f32.xlu1 %v829_v16 }
 0x1bd   :  { %v1734_v22 = vadd.f32 %v1634_v18, %v678_v48  ;;  %v832_v23 = vsel %vm789_vm1, %v771_v17, 0.0  ;;  %v774_v30 = vmul.f32 %v1726_v15, %v1726_v15 }
 0x1be   :  { %v1273_v25 = vpop.f32.mrf.mxu1  ;;  %833 = vadd.xlane.f32.xlu0 %v832_v23 }
 0x1bf   :  { %v1738_v26 = vadd.f32 %v1273_v25, %v1634_v18  ;;  %v773_v29 = vmul.f32 %v1734_v22, %v1734_v22  ;;  %v841_v39 = vsel %vm789_vm1, %v774_v30, 0.0 }
 0x1c0   :  { %v688_v32 = vpop.f32.mrf.mxu1  ;;  %836 = vadd.xlane.f32.xlu1 %v835_v27 }
 0x1c1   :  { %v1746_v33 = vadd.f32 %v1634_v18, %v688_v32  ;;  %v838_v34 = vsel %vm789_vm1, %v773_v29, 0.0  ;;  %v776_v41 = vmul.f32 %v1738_v26, %v1738_v26 }
 0x1c2   :  { %v1276_v35 = vpop.f32.mrf.mxu1  ;;  %839 = vadd.xlane.f32.xlu0 %v838_v34 }
 0x1c3   :  { %v1750_v37 = vadd.f32 %v1276_v35, %v1634_v18  ;;  %v775_v40 = vmul.f32 %v1746_v33, %v1746_v33  ;;  %v847_v50 = vsel %vm789_vm1, %v776_v41, 0.0 }
 0x1c4   :  { %v698_v42 = vpop.f32.mrf.mxu1  ;;  %842 = vadd.xlane.f32.xlu1 %v841_v39 }
 0x1c5   :  { %v1758_v44 = vadd.f32 %v1634_v18, %v698_v42  ;;  %v844_v45 = vsel %vm789_vm1, %v775_v40, 0.0  ;;  %v778_v53 = vmul.f32 %v1750_v37, %v1750_v37 }
 0x1c6   :  { %v1279_v47 = vpop.f32.mrf.mxu1  ;;  %845 = vadd.xlane.f32.xlu0 %v844_v45 }
 0x1c7   :  { %v1762_v49 = vadd.f32 %v1279_v47, %v1634_v18  ;;  %v777_v51 = vmul.f32 %v1758_v44, %v1758_v44  ;;  %v853_v61 = vsel %vm789_vm1, %v778_v53, 0.0 }
 0x1c8   :  { %v708_v54 = vpop.f32.mrf.mxu1  ;;  %848 = vadd.xlane.f32.xlu1 %v847_v50 }
 0x1c9   :  { %v1770_v56 = vadd.f32 %v1634_v18, %v708_v54  ;;  %v850_v57 = vsel %vm789_vm1, %v777_v51, 0.0  ;;  %v780_v0 = vmul.f32 %v1762_v49, %v1762_v49 }
 0x1ca   :  { %v1282_v58 = vpop.f32.mrf.mxu1  ;;  %851 = vadd.xlane.f32.xlu0 %v850_v57 }
 0x1cb   :  { %v1774_v59 = vadd.f32 %v1282_v58, %v1634_v18  ;;  %v779_v62 = vmul.f32 %v1770_v56, %v1770_v56  ;;  %v859_v8 = vsel %vm789_vm1, %v780_v0, 0.0 }
 0x1cc   :  { %v718_v1 = vpop.f32.mrf.mxu1  ;;  %854 = vadd.xlane.f32.xlu1 %v853_v61 }
 0x1cd   :  { %v1782_v2 = vadd.f32 %v1634_v18, %v718_v1  ;;  %v856_v3 = vsel %vm789_vm1, %v779_v62, 0.0  ;;  %v782_v10 = vmul.f32 %v1774_v59, %v1774_v59 }
 0x1ce   :  { %v1285_v5 = vpop.f32.mrf.mxu1  ;;  %857 = vadd.xlane.f32.xlu0 %v856_v3 }
 0x1cf   :  { %v1786_v6 = vadd.f32 %v1285_v5, %v1634_v18  ;;  %v781_v9 = vmul.f32 %v1782_v2, %v1782_v2  ;;  %v865_v19 = vsel %vm789_vm1, %v782_v10, 0.0 }
 0x1d0   :  { %v728_v11 = vpop.f32.mrf.mxu1  ;;  %860 = vadd.xlane.f32.xlu1 %v859_v8 }
 0x1d1   :  { %v1794_v13 = vadd.f32 %v1634_v18, %v728_v11  ;;  %v862_v14 = vsel %vm789_vm1, %v781_v9, 0.0  ;;  %v784_v23 = vmul.f32 %v1786_v6, %v1786_v6 }
 0x1d2   :  { %v1288_v16 = vpop.f32.mrf.mxu1  ;;  %863 = vadd.xlane.f32.xlu0 %v862_v14 }
 0x1d3   :  { %v1798_v17 = vadd.f32 %v1288_v16, %v1634_v18  ;;  %v783_v48 = vmul.f32 %v1794_v13, %v1794_v13  ;;  %v871_v34 = vsel %vm789_vm1, %v784_v23, 0.0 }
 0x1d4   :  { %v738_v25 = vpop.f32.mrf.mxu1  ;;  %866 = vadd.xlane.f32.xlu1 %v865_v19 }
 0x1d5   :  { %v1806_v27 = vadd.f32 %v1634_v18, %v738_v25  ;;  %v868_v29 = vsel %vm789_vm1, %v783_v48, 0.0  ;;  %v786_v39 = vmul.f32 %v1798_v17, %v1798_v17 }
 0x1d6   :  { %v1291_v30 = vpop.f32.mrf.mxu1  ;;  %869 = vadd.xlane.f32.xlu0 %v868_v29 }
 0x1d7   :  { %v1810_v32 = vadd.f32 %v1291_v30, %v1634_v18  ;;  %v785_v35 = vmul.f32 %v1806_v27, %v1806_v27  ;;  %v877_v45 = vsel %vm789_vm1, %v786_v39, 0.0 }
 0x1d8   :  { %v748_v40 = vpop.f32.mrf.mxu1  ;;  %872 = vadd.xlane.f32.xlu1 %v871_v34 }
 0x1d9   :  { %v1818_v41 = vadd.f32 %v1634_v18, %v748_v40  ;;  %v874_v42 = vsel %vm789_vm1, %v785_v35, 0.0  ;;  %v788_v50 = vmul.f32 %v1810_v32, %v1810_v32 }
 0x1da   :  { %875 = vadd.xlane.f32.xlu0 %v874_v42 }
 0x1db   :  { %v787_v47 = vmul.f32 %v1818_v41, %v1818_v41  ;;  %v883_v53 = vsel %vm789_vm1, %v788_v50, 0.0 }
 0x1dc   :  { %878 = vadd.xlane.f32.xlu1 %v877_v45 }
 0x1dd   :  { %v880_v51 = vsel %vm789_vm1, %v787_v47, 0.0 }
 0x1de   :  { %881 = vadd.xlane.f32.xlu0 %v880_v51 }
 0x1e0   :  { %884 = vadd.xlane.f32.xlu1 %v883_v53 }
 0x229   :  { %v795_v18 = vpop.xlane.xlu0 %794 }
 0x22a   :  { %v887_v54 = vmax.f32 %v795_v18, 1e-24 }
 0x22c   :  { %1292 = vrsqrt.f32 %v887_v54 }
 0x22d   :  { %v801_v57 = vpop.xlane.xlu1 %800  ;;  %v792_v58 = vpop.xlane.xlu0 %791 }
 0x22e   :  { %v889_v61 = vmax.f32 %v801_v57, 1e-24  ;;  %v886_v62 = vmax.f32 %v792_v58, 1e-24 }
 0x230   :  { %1294 = vrsqrt.f32 %v889_v61 }
 0x231   :  { %1296 = vrsqrt.f32 %v886_v62  ;;  %v798_v0 = vpop.xlane.xlu1 %797 }
 0x232   :  { %v888_v1 = vmax.f32 %v798_v0, 1e-24 }
 0x233   :  { %v804_v3 = vpop.xlane.xlu0 %803 }
 0x234   :  { %1298 = vrsqrt.f32 %v888_v1  ;;  %v890_v5 = vmax.f32 %v804_v3, 1e-24 }
 0x235   :  { %v807_v8 = vpop.xlane.xlu1 %806 }
 0x236   :  { %1300 = vrsqrt.f32 %v890_v5  ;;  %v891_v9 = vmax.f32 %v807_v8, 1e-24 }
 0x237   :  { %v810_v10 = vpop.xlane.xlu0 %809 }
 0x238   :  { %1302 = vrsqrt.f32 %v891_v9  ;;  %v892_v11 = vmax.f32 %v810_v10, 1e-24 }
 0x239   :  { %v1293_v14 = vpop.eup %1292  ;;  %v813_v16 = vpop.xlane.xlu1 %812 }
 0x23a   :  { %v951_v19 = vmul.f32 %v1293_v14, %v1637_v20  ;;  %1304 = vrsqrt.f32 %v892_v11  ;;  %v893_v48 = vmax.f32 %v813_v16, 1e-24 }
 0x23b   :  { %v816_v23 = vpop.xlane.xlu0 %815 }
 0x23c   :  { %983 = vst.msk [vmem:[%s1993_s5 + $0x8] sm:$0xff] %vm789_vm1, %v951_v19  ;;  %1306 = vrsqrt.f32 %v893_v48  ;;  %v894_v25 = vmax.f32 %v816_v23, 1e-24 }
 0x23d   :  { %v1295_v29 = vpop.eup %1294  ;;  %v819_v30 = vpop.xlane.xlu1 %818 }
 0x23e   :  { %v1297_v34 = vpop.eup %1296  ;;  %v953_v35 = vmul.f32 %v1295_v29, %v1645_v24  ;;  %1308 = vrsqrt.f32 %v894_v25  ;;  %v895_v39 = vmax.f32 %v819_v30, 1e-24 }
 0x23f   :  { %v950_v40 = vmul.f32 %v1297_v34, %v1640_v21  ;;  %v822_v20 = vpop.xlane.xlu0 %821 }
 0x240   :  { %985 = vst.msk [vmem:[%s1993_s5 + $0x18] sm:$0xff] %vm789_vm1, %v953_v35  ;;  %1310 = vrsqrt.f32 %v895_v39  ;;  %v896_v42 = vmax.f32 %v822_v20, 1e-24 }
 0x241   :  { %v1299_v45 = vpop.eup %1298  ;;  %982 = vst.msk [vmem:[%s1993_s5] sm:$0xff] %vm789_vm1, %v950_v40  ;;  %v825_v47 = vpop.xlane.xlu1 %824 }
 0x242   :  { %v952_v24 = vmul.f32 %v1299_v45, %v1651_v28  ;;  %1312 = vrsqrt.f32 %v896_v42  ;;  %v897_v50 = vmax.f32 %v825_v47, 1e-24 }
 0x243   :  { %v1301_v21 = vpop.eup %1300  ;;  %v828_v51 = vpop.xlane.xlu0 %827 }
 0x244   :  { %984 = vst.msk [vmem:[%s1993_s5 + $0x10] sm:$0xff] %vm789_vm1, %v952_v24  ;;  %v954_v53 = vmul.f32 %v1301_v21, %v1663_v36  ;;  %1314 = vrsqrt.f32 %v897_v50  ;;  %v898_v18 = vmax.f32 %v828_v51, 1e-24 }
 0x245   :  { %v1303_v54 = vpop.eup %1302  ;;  %v831_v57 = vpop.xlane.xlu1 %830 }
 0x246   :  { %986 = vst.msk [vmem:[%s1993_s5 + $0x20] sm:$0xff] %vm789_vm1, %v954_v53  ;;  %v955_v28 = vmul.f32 %v1303_v54, %v1656_v31  ;;  %1316 = vrsqrt.f32 %v898_v18  ;;  %v899_v58 = vmax.f32 %v831_v57, 1e-24 }
 0x247   :  { %v1305_v61 = vpop.eup %1304  ;;  %v834_v62 = vpop.xlane.xlu0 %833 }
 0x248   :  { %987 = vst.msk [vmem:[%s1993_s5 + $0x28] sm:$0xff] %vm789_vm1, %v955_v28  ;;  %v956_v36 = vmul.f32 %v1305_v61, %v1674_v43  ;;  %1318 = vrsqrt.f32 %v899_v58  ;;  %v900_v0 = vmax.f32 %v834_v62, 1e-24 }
 0x249   :  { %v1307_v1 = vpop.eup %1306  ;;  %v837_v3 = vpop.xlane.xlu1 %836 }
 0x24a   :  { %988 = vst.msk [vmem:[%s1993_s5 + $0x30] sm:$0xff] %vm789_vm1, %v956_v36  ;;  %v957_v31 = vmul.f32 %v1307_v1, %v1666_v38  ;;  %1320 = vrsqrt.f32 %v900_v0  ;;  %v901_v5 = vmax.f32 %v837_v3, 1e-24 }
 0x24b   :  { %v1309_v8 = vpop.eup %1308  ;;  %v840_v9 = vpop.xlane.xlu0 %839 }
 0x24c   :  { %989 = vst.msk [vmem:[%s1993_s5 + $0x38] sm:$0xff] %vm789_vm1, %v957_v31  ;;  %v958_v43 = vmul.f32 %v1309_v8, %v1686_v52  ;;  %1322 = vrsqrt.f32 %v901_v5  ;;  %v902_v10 = vmax.f32 %v840_v9, 1e-24 }
 0x24d   :  { %v1311_v11 = vpop.eup %1310  ;;  %v843_v14 = vpop.xlane.xlu1 %842 }
 0x24e   :  { %990 = vst.msk [vmem:[%s1993_s5 + $0x40] sm:$0xff] %vm789_vm1, %v958_v43  ;;  %v959_v38 = vmul.f32 %v1311_v11, %v1678_v46  ;;  %1324 = vrsqrt.f32 %v902_v10  ;;  %v903_v16 = vmax.f32 %v843_v14, 1e-24 }
 0x24f   :  { %v1313_v19 = vpop.eup %1312  ;;  %v846_v48 = vpop.xlane.xlu0 %845 }
 0x250   :  { %991 = vst.msk [vmem:[%s1993_s5 + $0x48] sm:$0xff] %vm789_vm1, %v959_v38  ;;  %v960_v52 = vmul.f32 %v1313_v19, %v1698_v60  ;;  %1326 = vrsqrt.f32 %v903_v16  ;;  %v904_v23 = vmax.f32 %v846_v48, 1e-24 }
 0x251   :  { %v1315_v25 = vpop.eup %1314  ;;  %v849_v29 = vpop.xlane.xlu1 %848 }
 0x252   :  { %992 = vst.msk [vmem:[%s1993_s5 + $0x50] sm:$0xff] %vm789_vm1, %v960_v52  ;;  %v961_v46 = vmul.f32 %v1315_v25, %v1690_v55  ;;  %1328 = vrsqrt.f32 %v904_v23  ;;  %v905_v30 = vmax.f32 %v849_v29, 1e-24 }
 0x253   :  { %v1317_v34 = vpop.eup %1316  ;;  %v852_v35 = vpop.xlane.xlu0 %851 }
 0x254   :  { %993 = vst.msk [vmem:[%s1993_s5 + $0x58] sm:$0xff] %vm789_vm1, %v961_v46  ;;  %v962_v60 = vmul.f32 %v1317_v34, %v1710_v4  ;;  %1330 = vrsqrt.f32 %v905_v30  ;;  %v906_v39 = vmax.f32 %v852_v35, 1e-24 }
 0x255   :  { %v1319_v40 = vpop.eup %1318  ;;  %v855_v20 = vpop.xlane.xlu1 %854 }
 0x256   :  { %994 = vst.msk [vmem:[%s1993_s5 + $0x60] sm:$0xff] %vm789_vm1, %v962_v60  ;;  %v963_v55 = vmul.f32 %v1319_v40, %v1702_v63  ;;  %1332 = vrsqrt.f32 %v906_v39  ;;  %v907_v42 = vmax.f32 %v855_v20, 1e-24 }
 0x257   :  { %v1321_v45 = vpop.eup %1320  ;;  %v858_v47 = vpop.xlane.xlu0 %857 }
 0x258   :  { %995 = vst.msk [vmem:[%s1993_s5 + $0x68] sm:$0xff] %vm789_vm1, %v963_v55  ;;  %v964_v4 = vmul.f32 %v1321_v45, %v1722_v12  ;;  %1334 = vrsqrt.f32 %v907_v42  ;;  %v908_v24 = vmax.f32 %v858_v47, 1e-24 }
 0x259   :  { %v1323_v50 = vpop.eup %1322  ;;  %v861_v21 = vpop.xlane.xlu1 %860 }
 0x25a   :  { %996 = vst.msk [vmem:[%s1993_s5 + $0x70] sm:$0xff] %vm789_vm1, %v964_v4  ;;  %v965_v63 = vmul.f32 %v1323_v50, %v1714_v7  ;;  %1336 = vrsqrt.f32 %v908_v24  ;;  %v909_v51 = vmax.f32 %v861_v21, 1e-24 }
 0x25b   :  { %v1325_v53 = vpop.eup %1324  ;;  %v864_v18 = vpop.xlane.xlu0 %863 }
 0x25c   :  { %997 = vst.msk [vmem:[%s1993_s5 + $0x78] sm:$0xff] %vm789_vm1, %v965_v63  ;;  %v966_v12 = vmul.f32 %v1325_v53, %v1734_v22  ;;  %1338 = vrsqrt.f32 %v909_v51  ;;  %v910_v54 = vmax.f32 %v864_v18, 1e-24 }
 0x25d   :  { %v1327_v57 = vpop.eup %1326  ;;  %v867_v28 = vpop.xlane.xlu1 %866 }
 0x25e   :  { %998 = vst.msk [vmem:[%s1993_s5 + $0x80] sm:$0xff] %vm789_vm1, %v966_v12  ;;  %v967_v7 = vmul.f32 %v1327_v57, %v1726_v15  ;;  %1340 = vrsqrt.f32 %v910_v54  ;;  %v911_v58 = vmax.f32 %v867_v28, 1e-24 }
 0x25f   :  { %v1329_v61 = vpop.eup %1328  ;;  %v870_v62 = vpop.xlane.xlu0 %869 }
 0x260   :  { %999 = vst.msk [vmem:[%s1993_s5 + $0x88] sm:$0xff] %vm789_vm1, %v967_v7  ;;  %v968_v22 = vmul.f32 %v1329_v61, %v1746_v33  ;;  %1342 = vrsqrt.f32 %v911_v58  ;;  %v912_v36 = vmax.f32 %v870_v62, 1e-24 }
 0x261   :  { %v1331_v0 = vpop.eup %1330  ;;  %v873_v1 = vpop.xlane.xlu1 %872 }
 0x262   :  { %1000 = vst.msk [vmem:[%s1993_s5 + $0x90] sm:$0xff] %vm789_vm1, %v968_v22  ;;  %v969_v15 = vmul.f32 %v1331_v0, %v1738_v26  ;;  %1344 = vrsqrt.f32 %v912_v36  ;;  %v913_v3 = vmax.f32 %v873_v1, 1e-24 }
 0x263   :  { %v1333_v31 = vpop.eup %1332  ;;  %v876_v5 = vpop.xlane.xlu0 %875 }
 0x264   :  { %1001 = vst.msk [vmem:[%s1993_s5 + $0x98] sm:$0xff] %vm789_vm1, %v969_v15  ;;  %v970_v33 = vmul.f32 %v1333_v31, %v1758_v44  ;;  %1346 = vrsqrt.f32 %v913_v3  ;;  %v914_v8 = vmax.f32 %v876_v5, 1e-24 }
 0x265   :  { %v1335_v9 = vpop.eup %1334  ;;  %v879_v43 = vpop.xlane.xlu1 %878 }
 0x266   :  { %1002 = vst.msk [vmem:[%s1993_s5 + $0xa0] sm:$0xff] %vm789_vm1, %v970_v33  ;;  %v971_v26 = vmul.f32 %v1335_v9, %v1750_v37  ;;  %1348 = vrsqrt.f32 %v914_v8  ;;  %v915_v10 = vmax.f32 %v879_v43, 1e-24 }
 0x267   :  { %v1337_v11 = vpop.eup %1336  ;;  %v882_v14 = vpop.xlane.xlu0 %881 }
 0x268   :  { %1003 = vst.msk [vmem:[%s1993_s5 + $0xa8] sm:$0xff] %vm789_vm1, %v971_v26  ;;  %v972_v44 = vmul.f32 %v1337_v11, %v1770_v56  ;;  %1350 = vrsqrt.f32 %v915_v10  ;;  %v916_v38 = vmax.f32 %v882_v14, 1e-24 }
 0x269   :  { %v1339_v16 = vpop.eup %1338  ;;  %v885_v19 = vpop.xlane.xlu1 %884 }
 0x26a   :  { %1004 = vst.msk [vmem:[%s1993_s5 + $0xb0] sm:$0xff] %vm789_vm1, %v972_v44  ;;  %v973_v37 = vmul.f32 %v1339_v16, %v1762_v49  ;;  %1352 = vrsqrt.f32 %v916_v38  ;;  %v917_v48 = vmax.f32 %v885_v19, 1e-24 }
 0x26b   :  { %v1341_v52 = vpop.eup %1340 }
 0x26c   :  { %1005 = vst.msk [vmem:[%s1993_s5 + $0xb8] sm:$0xff] %vm789_vm1, %v973_v37  ;;  %v974_v56 = vmul.f32 %v1341_v52, %v1782_v2  ;;  %1354 = vrsqrt.f32 %v917_v48 }
 0x26d   :  { %v1343_v23 = vpop.eup %1342 }
 0x26e   :  { %1006 = vst.msk [vmem:[%s1993_s5 + $0xc0] sm:$0xff] %vm789_vm1, %v974_v56  ;;  %v975_v25 = vmul.f32 %v1343_v23, %v1774_v59 }
 0x26f   :  { %v1345_v49 = vpop.eup %1344 }
 0x270   :  { %1007 = vst.msk [vmem:[%s1993_s5 + $0xc8] sm:$0xff] %vm789_vm1, %v975_v25  ;;  %v976_v29 = vmul.f32 %v1345_v49, %v1794_v13 }
 0x271   :  { %v1347_v46 = vpop.eup %1346 }
 0x272   :  { %1008 = vst.msk [vmem:[%s1993_s5 + $0xd0] sm:$0xff] %vm789_vm1, %v976_v29  ;;  %v977_v2 = vmul.f32 %v1347_v46, %v1786_v6 }
 0x273   :  { %v1349_v30 = vpop.eup %1348 }
 0x274   :  { %1009 = vst.msk [vmem:[%s1993_s5 + $0xd8] sm:$0xff] %vm789_vm1, %v977_v2  ;;  %v978_v59 = vmul.f32 %v1349_v30, %v1806_v27 }
 0x275   :  { %v1351_v34 = vpop.eup %1350 }
 0x276   :  { %1010 = vst.msk [vmem:[%s1993_s5 + $0xe0] sm:$0xff] %vm789_vm1, %v978_v59  ;;  %v979_v13 = vmul.f32 %v1351_v34, %v1798_v17 }
 0x277   :  { %v1353_v35 = vpop.eup %1352 }
 0x278   :  { %1011 = vst.msk [vmem:[%s1993_s5 + $0xe8] sm:$0xff] %vm789_vm1, %v979_v13  ;;  %v980_v6 = vmul.f32 %v1353_v35, %v1818_v41 }
 0x279   :  { %v1355_v60 = vpop.eup %1354 }
 0x27a   :  { %1012 = vst.msk [vmem:[%s1993_s5 + $0xf0] sm:$0xff] %vm789_vm1, %v980_v6  ;;  %v981_v27 = vmul.f32 %v1355_v60, %v1810_v32 }
 0x27c   :  { %1013 = vst.msk [vmem:[%s1993_s5 + $0xf8] sm:$0xff] %vm789_vm1, %v981_v27 }

</bundles_post_ra>
